<compile_context>
chip_gen: v5e
topology: v5e:2x2
jax: 0.10.0
libtpu: 0.0.40
codegen_flags: <defaults>
</compile_context>

<pallas_src>
import functools

import jax
import jax.numpy as jnp
from jax.experimental import pallas as pl
from jax.experimental.pallas import tpu as pltpu

_LANES = 128
_SUBLANES = 8
_MAX_TILE_ROWS = 512  # 512x128 f32 = 256 KiB per input block


def _round_up(x, m):
    return (x + m - 1) // m * m


def _masked_mae_kernel(gt_ref, pred_ref, out_ref, acc_ref, *, inv_denom):
    step = pl.program_id(0)

    @pl.when(step == 0)
    def _():
        acc_ref[...] = jnp.zeros_like(acc_ref)

    gt = gt_ref[...].astype(jnp.float32)
    pred = pred_ref[...].astype(jnp.float32)

    # Same semantics as the mask/mul/nan_to_num chain:
    #   gt NaN              -> both sides become 0   (contributes 0)
    #   pred NaN, gt finite -> pred becomes 0        (contributes |gt|)
    gt_nan = jnp.isnan(gt)
    gt_m = jnp.where(gt_nan, 0.0, gt)
    pred_m = jnp.where(jnp.logical_or(gt_nan, jnp.isnan(pred)), 0.0, pred)

    # Elementwise accumulate into a tile-shaped f32 accumulator (VPU only);
    # defer the cross-lane reduction to the final grid step.
    acc_ref[...] += jnp.abs(gt_m - pred_m)

    @pl.when(step == pl.num_programs(0) - 1)
    def _():
        out_ref[0, 0] = jnp.sum(acc_ref[...]) * inv_denom


def masked_mae_loss(gt, pred, *, force_pallas=False):
    """gt, pred: [bs, ql, 1] -> scalar f32 masked-MAE loss."""
    assert gt.shape == pred.shape and gt.shape[-1] == 1
    bs, q_len = gt.shape[:2]
    n = bs * q_len
    inv_denom = 1.0 / (float(q_len) * float(bs))

    if n < _SUBLANES * _LANES and not force_pallas:
        # Tiny input: pallas_call launch overhead dwarfs the work; let XLA fuse.
        gt_nan = jnp.isnan(gt)
        gt_m = jnp.where(gt_nan, 0.0, gt).astype(jnp.float32)
        pred_m = jnp.where(
            jnp.logical_or(gt_nan, jnp.isnan(pred)), 0.0, pred
        ).astype(jnp.float32)
        return jnp.sum(jnp.abs(gt_m - pred_m)) * inv_denom

    # Lane-dense flatten + pad. gt padded with NaN (=> masked out), pred with 0.
    rows = max(_SUBLANES, _round_up(-(-n // _LANES), _SUBLANES))
    tile_rows = min(_MAX_TILE_ROWS, rows)
    rows = _round_up(rows, tile_rows)
    padded = rows * _LANES

    gt2d = jnp.pad(gt.reshape(n), (0, padded - n), constant_values=jnp.nan)
    gt2d = gt2d.reshape(rows, _LANES)
    pred2d = jnp.pad(pred.reshape(n), (0, padded - n), constant_values=0)
    pred2d = pred2d.reshape(rows, _LANES)

    num_tiles = rows // tile_rows
    kernel = functools.partial(_masked_mae_kernel, inv_denom=inv_denom)

    out = pl.pallas_call(
        kernel,
        out_shape=jax.ShapeDtypeStruct((1, 1), jnp.float32),
        grid_spec=pltpu.PrefetchScalarGridSpec(
            num_scalar_prefetch=0,
            grid=(num_tiles,),
            in_specs=[
                pl.BlockSpec((tile_rows, _LANES), lambda i: (i, 0)),
                pl.BlockSpec((tile_rows, _LANES), lambda i: (i, 0)),
            ],
            out_specs=pl.BlockSpec(memory_space=pltpu.MemorySpace.SMEM),
            scratch_shapes=[pltpu.VMEM((tile_rows, _LANES), jnp.float32)],
        ),
        compiler_params=pltpu.CompilerParams(
            # Single axis is the reduction axis (accumulator is resident).
            dimension_semantics=("arbitrary",),
        ),
    )(gt2d, pred2d)
    return out[0, 0]


def _reference(gt, pred):
    bs, q_len = gt.shape[:2]
    mask = jnp.where(jnp.isnan(gt), 0.0, 1.0)
    gt_m = jnp.nan_to_num(gt * mask)
    pred_m = jnp.nan_to_num(pred * mask)
    return jnp.sum(jnp.abs(gt_m - pred_m)) / q_len / bs


if __name__ == "__main__":
    key = jax.random.PRNGKey(0)
    k1, k2, k3, k4 = jax.random.split(key, 4)

    # --- small shape from the module spec (bs=2, ql=8), forced Pallas path ---
    bs, q_len = 2, 8
    gt_s = jax.random.normal(k1, (bs, q_len, 1), dtype=jnp.float32)
    pred_s = jax.random.normal(k2, (bs, q_len, 1), dtype=jnp.float32)
    gt_s = gt_s.at[0, 2, 0].set(jnp.nan)
    gt_s = gt_s.at[1, 5, 0].set(jnp.nan)
    pred_s = pred_s.at[0, 4, 0].set(jnp.nan)  # pred-NaN-with-finite-gt path

    loss_s = jax.block_until_ready(masked_mae_loss(gt_s, pred_s, force_pallas=True))
    ref_s = jax.block_until_ready(_reference(gt_s, pred_s))
    assert jnp.allclose(loss_s, ref_s, rtol=1e-6, atol=1e-6), (loss_s, ref_s)

    # --- larger shape: exercises the multi-tile pipelined grid + padding ---
    bs2, q2 = 8, 10000
    gt_l = jax.random.normal(k3, (bs2, q2, 1), dtype=jnp.float32)
    pred_l = jax.random.normal(k4, (bs2, q2, 1), dtype=jnp.float32)
    nan_mask = jax.random.bernoulli(k1, 0.1, (bs2, q2, 1))
    gt_l = jnp.where(nan_mask, jnp.nan, gt_l)

    loss_l = jax.block_until_ready(masked_mae_loss(gt_l, pred_l))
    ref_l = jax.block_until_ready(_reference(gt_l, pred_l))
    assert jnp.allclose(loss_l, ref_l, rtol=1e-5, atol=1e-5), (loss_l, ref_l)

    print("KERNEL_OK")
</pallas_src>

<mosaic_0001>
module attributes {stable_mosaic.version = 11 : i64} {
  func.func @_masked_mae_kernel(%arg0: i32, %arg1: memref<8x128xf32, #tpu.memory_space<vmem>>, %arg2: memref<8x128xf32, #tpu.memory_space<vmem>>, %arg3: memref<1x1xf32, #tpu.memory_space<smem>>, %arg4: memref<8x128xf32, #tpu.memory_space<vmem>>) attributes {dimension_semantics = [#tpu.dimension_semantics<arbitrary>], iteration_bounds = array<i64: 1>, scalar_prefetch = 0 : i64, scratch_operands = 1 : i64, tpu.core_type = #tpu.core_type<tc>, window_params = [{transform_indices = @transform_0, window_bounds = array<i64: 8, 128>}, {transform_indices = @transform_1, window_bounds = array<i64: 8, 128>}, {transform_indices = @transform_2, window_bounds = array<i64: 1, 1>}]} {
    %c0_i32 = arith.constant 0 : i32
    %0 = arith.cmpi eq, %arg0, %c0_i32 : i32
    %1 = arith.extui %0 : i1 to i32
    %c0_i32_0 = arith.constant 0 : i32
    %2 = arith.cmpi ne, %1, %c0_i32_0 : i32
    scf.if %2 {
      %cst_11 = arith.constant 0.000000e+00 : f32
      %20 = vector.broadcast %cst_11 : f32 to vector<8x128xf32>
      %c0_12 = arith.constant 0 : index
      %c0_13 = arith.constant 0 : index
      %21 = vector.load %arg4[%c0_12, %c0_13] : memref<8x128xf32, #tpu.memory_space<vmem>>, vector<8x128xf32>
      tpu.vector_store %arg4[%c0_12, %c0_13], %20 {strides = array<i32>} : memref<8x128xf32, #tpu.memory_space<vmem>>, vector<8x128xf32>,
    } else {
    }
    %c0 = arith.constant 0 : index
    %c0_1 = arith.constant 0 : index
    %3 = vector.load %arg1[%c0, %c0_1] : memref<8x128xf32, #tpu.memory_space<vmem>>, vector<8x128xf32>
    %c0_2 = arith.constant 0 : index
    %c0_3 = arith.constant 0 : index
    %4 = vector.load %arg2[%c0_2, %c0_3] : memref<8x128xf32, #tpu.memory_space<vmem>>, vector<8x128xf32>
    %5 = arith.cmpf one, %3, %3 : vector<8x128xf32>
    %cst = arith.constant 0.000000e+00 : f32
    %6 = vector.broadcast %cst : f32 to vector<8x128xf32>
    %7 = arith.select %5, %6, %3 : vector<8x128xi1>, vector<8x128xf32>
    %8 = arith.cmpf one, %4, %4 : vector<8x128xf32>
    %9 = arith.ori %5, %8 : vector<8x128xi1>
    %cst_4 = arith.constant 0.000000e+00 : f32
    %10 = vector.broadcast %cst_4 : f32 to vector<8x128xf32>
    %11 = arith.select %9, %10, %4 : vector<8x128xi1>, vector<8x128xf32>
    %c0_5 = arith.constant 0 : index
    %c0_6 = arith.constant 0 : index
    %12 = vector.load %arg4[%c0_5, %c0_6] : memref<8x128xf32, #tpu.memory_space<vmem>>, vector<8x128xf32>
    %13 = arith.subf %7, %11 : vector<8x128xf32>
    %14 = math.absf %13 : vector<8x128xf32>
    %15 = arith.addf %12, %14 : vector<8x128xf32>
    %c0_7 = arith.constant 0 : index
    %c0_8 = arith.constant 0 : index
    %16 = vector.load %arg4[%c0_7, %c0_8] : memref<8x128xf32, #tpu.memory_space<vmem>>, vector<8x128xf32>
    tpu.vector_store %arg4[%c0_7, %c0_8], %15 {strides = array<i32>} : memref<8x128xf32, #tpu.memory_space<vmem>>, vector<8x128xf32>,
    %c0_i32_9 = arith.constant 0 : i32
    %17 = arith.cmpi eq, %arg0, %c0_i32_9 : i32
    %18 = arith.extui %17 : i1 to i32
    %c0_i32_10 = arith.constant 0 : i32
    %19 = arith.cmpi ne, %18, %c0_i32_10 : i32
    scf.if %19 {
      %c0_11 = arith.constant 0 : index
      %c0_12 = arith.constant 0 : index
      %20 = vector.load %arg4[%c0_11, %c0_12] : memref<8x128xf32, #tpu.memory_space<vmem>>, vector<8x128xf32>
      %21 = vector.shape_cast %20 : vector<8x128xf32> to vector<1x8x128xf32>
      %cst_13 = arith.constant dense<0.000000e+00> : vector<1xf32>
      %22 = vector.multi_reduction <add>, %21, %cst_13 [1, 2] : vector<1x8x128xf32> to vector<1xf32>
      %23 = vector.shape_cast %22 : vector<1xf32> to vector<1x1x1xf32>
      %24 = vector.extract %23[0, 0, 0] : f32 from vector<1x1x1xf32>
      %cst_14 = arith.constant 6.250000e-02 : f32
      %25 = arith.mulf %24, %cst_14 : f32
      %c0_15 = arith.constant 0 : index
      %c0_16 = arith.constant 0 : index
      %26 = memref.load %arg3[%c0_15, %c0_16] : memref<1x1xf32, #tpu.memory_space<smem>>
      memref.store %25, %arg3[%c0_15, %c0_16] : memref<1x1xf32, #tpu.memory_space<smem>>
    } else {
    }
    return
  }
  func.func @transform_0(%arg0: i32) -> (i32, i32) {
    %c0_i32 = arith.constant 0 : i32
    %c0_i32_0 = arith.constant 0 : i32
    return %arg0, %c0_i32 : i32, i32
  }
  func.func @transform_1(%arg0: i32) -> (i32, i32) {
    %c0_i32 = arith.constant 0 : i32
    %c0_i32_0 = arith.constant 0 : i32
    return %arg0, %c0_i32 : i32, i32
  }
  func.func @transform_2(%arg0: i32) -> (i32, i32) {
    %c0_i32 = arith.constant 0 : i32
    %c0_i32_0 = arith.constant 0 : i32
    %c0_i32_1 = arith.constant 0 : i32
    return %c0_i32, %c0_i32_0 : i32, i32
  }
}

</mosaic_0001>

<bundles_post_ra>
// kernel: tpu_custom_call.1
= control target key start
LH: loop header
LB: loop body
LE: loop exit
PB: predicated region body
PF: predicated region fallthrough
CT: control target
= control target key end

     0   :  { %7 = vsyncpa [#allocation4], 0  ;;  %s188_s0 = inlined_call_operand.hbm [shape: f32[8,128], index: 0, kind: input, shape index: {}]   ;;  %s189_s1 = inlined_call_operand.hbm [shape: f32[8,128], index: 1, kind: input, shape index: {}]   ;;  %s190_s2 = inlined_call_operand.hbm [shape: f32[1,1], index: 2, kind: output, shape index: {}]  }
   0x1   :  { %8 = vsyncpa [#allocation7], 0 }
   0x2   :  { %9 = vsyncpa [#allocation5], 0  ;;  %s15_s11 = sshll.u32 %s188_s0, 4  ;;  %s161_s12 = smov [#allocation3]   ;;  %s16_s11 = int_to_ptr.hbm [resolvable:$true] %s15_s11 }
   0x3   :  { %s17_s13 = sshll.u32 %s161_s12, 4  ;;  %s26_s16 = sshll.u32 %s189_s1, 4  ;;  %s18_s13 = int_to_ptr.vmem [resolvable:$true] %s17_s13  ;;  %s27_s16 = int_to_ptr.hbm [resolvable:$true] %s26_s16 }
   0x4   :  { %20 = dma.hbm_to_vmem [thread:$0]  %s16_s11, 128, %s18_s13, [#allocation4]  }
   0x5   :  { %s162_s17 = smov [#allocation6]  }
   0x6   :  { %s28_s18 = sshll.u32 %s162_s17, 4  ;;  %s29_s18 = int_to_ptr.vmem [resolvable:$true] %s28_s18 }
   0x7   :  { %31 = dma.hbm_to_vmem [thread:$0]  %s27_s16, 128, %s29_s18, [#allocation7]  }
   0x8   :  { %155 = dma.done.wait [#allocation4], 128  }
   0x9   :  { %156 = vsyncadd [#allocation4], 4294967168 }
   0xa   :  { %157 = dma.done.wait [#allocation7], 128  }
   0xb   :  { %158 = vsyncadd [#allocation7], 4294967168  ;;  %v45_v0 = vld [vmem:[#allocation3] sm:$0xff]  ;;  %v46_v1 = vld [vmem:[#allocation6] sm:$0xff]  ;;  %s78_s19 = sshll.u32 %s190_s2, 4  ;;  %s163_s22 = smov [#allocation8]   ;;  %s79_s19 = int_to_ptr.hbm [resolvable:$true] %s78_s19 }
   0xc   :  { %vm47_vm0 = vcmp.ne.f32.partialorder %v45_v0, %v45_v0  ;;  %vm49_vm1 = vcmp.ne.f32.partialorder %v46_v1, %v46_v1 }
   0xd   :  { %v48_v2 = vsel %vm47_vm0, 0.0, %v45_v0  ;;  %vm50_vm2 = vmor %vm47_vm0, %vm49_vm1 }
   0xe   :  { %v51_v3 = vsel %vm50_vm2, 0.0, %v46_v1 }
   0xf   :  { %v53_v4 = vsub.f32 %v48_v2, %v51_v3 }
  0x11   :  { %v54_v5 = vand.u32 2147483647, %v53_v4 }
  0x13   :  { %61 = vadd.xlane.f32.xlu0 %v54_v5 }
  0x86   :  { %v62_v6 = vpop.xlane.xlu0 %61 }
  0x87   :  { %v63_v7 = vrot.slane %v62_v6, 4 }
  0x89   :  { %v64_v8 = vadd.f32 %v63_v7, %v62_v6 }
  0x8b   :  { %v65_v9 = vrot.slane %v64_v8, 2 }
  0x8d   :  { %v66_v10 = vadd.f32 %v65_v9, %v64_v8 }
  0x8f   :  { %v67_v11 = vrot.slane %v66_v10, 1 }
  0x91   :  { %v68_v12 = vadd.f32 %v67_v11, %v66_v10 }
  0x93   :  { %90 = vpush %v68_v12 }
  0xc4   :  { %s91_s20 = spop %90 }
  0xc5   :  { %s70_s21 = smul.f32 0.0625, %s91_s20 }
  0xc7   :  { %72 = sst [smem:[#allocation8]] %s70_s21 }
  0xc8   :  { %81 = dma.smem_to_hbm %s163_s22, 16, %s79_s19, [#allocation5]  }
  0xc9   :  { %159 = dma.done.wait [#allocation5], 16  }
  0xca   :  { %160 = vsyncadd [#allocation5], 4294967280 }
  0xcb   :  { %86 = sfence }
  0xcc   :  { %87 = vsyncpa [#allocation4], 1 }
  0xcd   :  { %88 = vsyncpa [#allocation7], 1 }
  0xce   :  { %89 = vsyncpa [#allocation5], 1 }

</bundles_post_ra>
